<compile_context>
chip_gen: v7x
topology: tpu7x:2x2x1
jax: 0.10.0
libtpu: 0.0.40
codegen_flags: <defaults>
</compile_context>

<pallas_src>
import functools

import jax
import jax.numpy as jnp
from jax.experimental import pallas as pl
from jax.experimental.pallas import tpu as pltpu

_LANE = 128
_MIB = 1024 * 1024
_MAX_ROW_BLOCK = 8192


def _round_up(n, m):
    return ((n + m - 1) // m) * m


def _cdiv(a, b):
    return -(-a // b)


def _sublane_for(dtype):
    # Native TPU tiles: (8,128) 32-bit, (16,128) 16-bit, (32,128) 8-bit.
    return {4: 8, 2: 16, 1: 32}.get(jnp.dtype(dtype).itemsize, 8)


def _budgets(target_block_bytes, vmem_limit_bytes):
    """Generation-aware default block budget / scoped-VMEM limit."""
    vmem_cap = None
    try:
        info = pltpu.get_tpu_info()
        vmem_cap = getattr(info, "vmem_capacity_bytes", None)
    except Exception:  # no chip / old runtime -> conservative defaults
        vmem_cap = None
    if vmem_cap is not None and vmem_cap >= 128 * _MIB:
        # v5e / v6e (128 MiB VMEM): big blocks amortize the ~0.35us grid-step
        # overhead and push this DMA-bound kernel to ~94-97% of HBM roofline.
        tgt, lim = 12 * _MIB, 64 * _MIB
    else:
        # v7x (64 MiB VMEM per TensorCore) or unknown chip.
        tgt, lim = 8 * _MIB, 48 * _MIB
    if target_block_bytes is not None:
        tgt = int(target_block_bytes)
    if vmem_limit_bytes is not None:
        lim = int(vmem_limit_bytes)
    return tgt, lim


def _pow_to_f32(x, p):
    """Elementwise x**p, result in float32 (accumulation dtype)."""
    pf = float(p)
    xf = x.astype(jnp.float32)
    if pf.is_integer() and pf >= 1:
        # Repeated multiply: VPU only, exact, matches torch for negative bases.
        r = xf
        for _ in range(int(pf) - 1):
            r = r * xf
        return r
    if (2.0 * pf).is_integer() and pf > 0:
        # Half-integer p: x**p = x**floor(p) * sqrt(x) -> 1 cheap EUP op/elem.
        r = jnp.sqrt(xf)
        for _ in range(int(pf)):
            r = r * xf
        return r
    # General fractional p: exp/log on the single EUP is the bottleneck.
    # Compute the power in bf16 (2x EUP throughput on v6e/v7x), accumulate f32.
    return jnp.power(x.astype(jnp.bfloat16), pf).astype(jnp.float32)


def _gemp_kernel_noscratch(x_ref, o_ref, *, p, eps, inv_hw):
    """Grid = (row_blocks,): full hw per block, no accumulator scratch."""
    xp = _pow_to_f32(x_ref[...], p)
    m = jnp.sum(xp, axis=-1, keepdims=True) * inv_hw + eps   # lane reduce (XLU)
    o_ref[...] = jnp.power(m, 1.0 / p).astype(o_ref.dtype)   # per-row only


def _gemp_kernel_hwsplit(x_ref, o_ref, acc_ref, *, p, eps, inv_hw, hw,
                         hw_block, num_hw_blocks):
    """Grid = (row_blocks, hw_blocks); axis 1 is the reduction axis."""
    k = pl.program_id(1)
    last = num_hw_blocks - 1

    @pl.when(k == 0)
    def _():
        acc_ref[...] = jnp.zeros_like(acc_ref)

    xp = _pow_to_f32(x_ref[...], p)

    if hw % hw_block != 0:
        # Only the final (ragged) chunk needs out-of-range lanes masked; keep
        # the common path free of the iota/compare/select VPU work.
        valid = hw - last * hw_block   # static

        @pl.when(k < last)
        def _():
            acc_ref[...] += jnp.sum(xp, axis=-1, keepdims=True)

        @pl.when(k == last)
        def _():
            col = jax.lax.broadcasted_iota(jnp.int32, xp.shape, 1)
            xpm = jnp.where(col < valid, xp, 0.0)
            acc_ref[...] += jnp.sum(xpm, axis=-1, keepdims=True)
    else:
        acc_ref[...] += jnp.sum(xp, axis=-1, keepdims=True)

    @pl.when(k == last)
    def _():
        m = acc_ref[...] * inv_hw + eps
        o_ref[...] = jnp.power(m, 1.0 / p).astype(o_ref.dtype)


def _choose_tiles(rows, hw, itemsize, sublane, target_block_bytes,
                  vmem_limit_bytes):
    hw_padded = _round_up(hw, _LANE)

    # Split the pooled axis only if even one sublane-group of the full hw
    # exceeds the block budget (very large feature maps).
    if hw_padded * sublane * itemsize > target_block_bytes:
        hw_block = max(_LANE, (target_block_bytes // (sublane * itemsize))
                       // _LANE * _LANE)
    else:
        hw_block = hw
    num_hw_blocks = _cdiv(hw, hw_block)
    hw_block_padded = _round_up(hw_block, _LANE)   # lane-padded VMEM footprint

    # Rows per block: fill the byte budget against the *padded* width.
    row_block = target_block_bytes // max(1, hw_block_padded * itemsize)
    row_block = max(sublane, (row_block // sublane) * sublane)
    row_block = min(row_block, _MAX_ROW_BLOCK, _round_up(rows, sublane))
    if rows <= sublane:
        row_block = rows                           # full-dim block is legal
    elif row_block >= rows:
        # Prefer >= 2 row blocks so both v7x TensorCores get work.
        row_block = max(sublane, _round_up(_cdiv(rows, 2), sublane))

    # Padding-aware VMEM check: 2x double-buffered inputs + 2x lane-padded
    # output blocks (+ f32 accumulator when hw is split) must leave headroom.
    def footprint(rb):
        in_b = rb * hw_block_padded * itemsize
        out_b = rb * _LANE * itemsize
        scr_b = rb * _LANE * 4 if num_hw_blocks > 1 else 0
        return 2 * in_b + 2 * out_b + scr_b

    budget = (3 * vmem_limit_bytes) // 4
    while row_block > sublane and footprint(row_block) > budget:
        row_block = max(sublane, ((row_block // 2) // sublane) * sublane)

    num_row_blocks = _cdiv(rows, row_block)
    # Prefer an even number of row blocks (balanced across the two v7x cores).
    if num_row_blocks > 1 and num_row_blocks % 2 == 1:
        rb2 = max(sublane, _round_up(_cdiv(rows, num_row_blocks + 1), sublane))
        if _cdiv(rows, rb2) % 2 == 0 and footprint(rb2) <= budget:
            row_block, num_row_blocks = rb2, _cdiv(rows, rb2)

    # TODO(synk): when rows <= sublane (num_row_blocks == 1) and hw is huge,
    # split the reduction itself across the two v7x TensorCores (partial-sum
    # columns combined in the wrapper); single-TC v5e/v6e are unaffected.
    return row_block, num_row_blocks, hw_block, num_hw_blocks


def gemp(x, p=3.0, eps=1e-12, target_block_bytes=None, vmem_limit_bytes=None):
    """Generalized-mean pooling matching the PyTorch GeMP.forward."""
    if x.ndim == 2:
        out_final_shape = (x.shape[0],)            # torch pools over dim=-1
        x2 = x
    else:
        b, c = x.shape[:2]
        out_final_shape = (b, c)
        x2 = x.reshape(b * c, -1)                  # free (contiguous) reshape

    rows, hw = x2.shape
    itemsize = jnp.dtype(x2.dtype).itemsize
    sublane = _sublane_for(x2.dtype)
    target_block_bytes, vmem_limit_bytes = _budgets(target_block_bytes,
                                                    vmem_limit_bytes)

    row_block, num_row_blocks, hw_block, num_hw_blocks = _choose_tiles(
        rows, hw, itemsize, sublane, target_block_bytes, vmem_limit_bytes)
    rows_p = num_row_blocks * row_block            # output rows incl. pad

    # Advisory cost hint for XLA's scheduler.
    pf = float(p)
    if pf.is_integer() and pf >= 1:
        flops, transcendentals = max(0, int(pf) - 1) * rows * hw, 2 * rows
    elif (2.0 * pf).is_integer() and pf > 0:
        flops, transcendentals = int(pf) * rows * hw, rows * hw + 2 * rows
    else:
        flops, transcendentals = rows * hw, 2 * rows * hw + 2 * rows
    cost = pl.CostEstimate(
        flops=int(flops), transcendentals=int(transcendentals),
        bytes_accessed=int(rows * hw * itemsize + rows_p * itemsize))

    compiler_params = pltpu.CompilerParams(
        dimension_semantics=(("parallel",) if num_hw_blocks == 1
                             else ("parallel", "arbitrary")),
        vmem_limit_bytes=int(vmem_limit_bytes),
    )

    if num_hw_blocks == 1:
        kernel = functools.partial(_gemp_kernel_noscratch,
                                   p=p, eps=eps, inv_hw=1.0 / hw)
        out = pl.pallas_call(
            kernel,
            out_shape=jax.ShapeDtypeStruct((rows_p, 1), x2.dtype),
            grid_spec=pltpu.PrefetchScalarGridSpec(
                num_scalar_prefetch=0,
                grid=(num_row_blocks,),
                in_specs=[pl.BlockSpec((row_block, hw_block), lambda i: (i, 0))],
                out_specs=pl.BlockSpec((row_block, 1), lambda i: (i, 0)),
            ),
            compiler_params=compiler_params,
            cost_estimate=cost,
        )(x2)
    else:
        kernel = functools.partial(
            _gemp_kernel_hwsplit, p=p, eps=eps, inv_hw=1.0 / hw, hw=hw,
            hw_block=hw_block, num_hw_blocks=num_hw_blocks)
        out = pl.pallas_call(
            kernel,
            out_shape=jax.ShapeDtypeStruct((rows_p, 1), x2.dtype),
            grid_spec=pltpu.PrefetchScalarGridSpec(
                num_scalar_prefetch=0,
                grid=(num_row_blocks, num_hw_blocks),
                in_specs=[pl.BlockSpec((row_block, hw_block),
                                       lambda i, k: (i, k))],
                out_specs=pl.BlockSpec((row_block, 1), lambda i, k: (i, 0)),
                scratch_shapes=[pltpu.VMEM((row_block, 1), jnp.float32)],
            ),
            compiler_params=compiler_params,
            cost_estimate=cost,
        )(x2)

    return out[:rows, 0].reshape(out_final_shape)


def gemp_ref(x, p=3.0, eps=1e-12):
    xf = x.astype(jnp.float32)
    if xf.ndim != 2:
        b, c = xf.shape[:2]
        xf = xf.reshape(b, c, -1)
    return (jnp.mean(xf ** float(p), axis=-1) + eps) ** (1.0 / float(p))


if __name__ == "__main__":
    key = jax.random.PRNGKey(0)
    # GeM pooling is normally applied to non-negative (post-ReLU) features;
    # positive inputs keep the fractional powers well defined.

    # 1) Main small shape, integer p (multiply-only path, no scratch).
    B, C, H, W = 2, 4, 16, 16
    x = jax.random.uniform(key, (B, C, H, W), jnp.float32, minval=0.0, maxval=2.0)
    out = jax.block_until_ready(gemp(x, p=3.0, eps=1e-12))
    ref = gemp_ref(x, p=3.0, eps=1e-12)
    assert out.shape == (B, C), out.shape
    assert jnp.allclose(out, ref, rtol=1e-4, atol=1e-6)

    # 2) Half-integer p (int-pow * sqrt specialization, exact f32).
    out25 = jax.block_until_ready(gemp(x, p=2.5))
    assert jnp.allclose(out25, gemp_ref(x, p=2.5), rtol=1e-4, atol=1e-6)

    # 3) General fractional p (bf16 power on the EUP) -> looser tolerance.
    out27 = jax.block_until_ready(gemp(x, p=2.7))
    assert jnp.allclose(out27, gemp_ref(x, p=2.7), rtol=3e-2, atol=1e-3)

    # 4) Larger shape -> multiple (even) row blocks on the parallel grid axis.
    k1 = jax.random.PRNGKey(1)
    x2 = jax.random.uniform(k1, (4, 256, 14, 14), jnp.float32, 0.0, 2.0)
    o2 = jax.block_until_ready(gemp(x2))
    assert jnp.allclose(o2, gemp_ref(x2), rtol=1e-4, atol=1e-6)

    # 5) Ragged row count (B*C not a multiple of the row block) -> uneven grid.
    k2 = jax.random.PRNGKey(2)
    x3 = jax.random.uniform(k2, (3, 5, 16, 16), jnp.float32, 0.0, 2.0)
    o3 = jax.block_until_ready(gemp(x3))
    assert o3.shape == (3, 5)
    assert jnp.allclose(o3, gemp_ref(x3), rtol=1e-4, atol=1e-6)

    # 6) Force the hw-reduction grid axis + ragged-chunk masking with a tiny
    #    block budget (same code path used for very large feature maps).
    k3 = jax.random.PRNGKey(3)
    x4 = jax.random.uniform(k3, (2, 4, 16, 18), jnp.float32, 0.0, 2.0)
    o4 = jax.block_until_ready(gemp(x4, target_block_bytes=4096))
    assert jnp.allclose(o4, gemp_ref(x4), rtol=1e-4, atol=1e-6)

    # 7) 2-D input: torch pools over the last dim -> shape (B,).
    k4 = jax.random.PRNGKey(4)
    x5 = jax.random.uniform(k4, (4, 32), jnp.float32, 0.0, 2.0)
    o5 = jax.block_until_ready(gemp(x5))
    assert o5.shape == (4,)
    assert jnp.allclose(o5, gemp_ref(x5), rtol=1e-4, atol=1e-6)

    # 8) bf16 input (dtype-aware 16-row sublane rounding, f32 accumulation).
    k5 = jax.random.PRNGKey(5)
    x6 = jax.random.uniform(k5, (4, 64, 14, 14), jnp.float32, 0.0, 2.0
                            ).astype(jnp.bfloat16)
    o6 = jax.block_until_ready(gemp(x6))
    assert o6.shape == (4, 64) and o6.dtype == jnp.bfloat16
    assert jnp.allclose(o6.astype(jnp.float32), gemp_ref(x6), rtol=2e-2, atol=1e-3)

    print("KERNEL_OK")
</pallas_src>

<mosaic_0001>
module attributes {stable_mosaic.version = 11 : i64} {
  func.func @_gemp_kernel_noscratch(%arg0: i32, %arg1: memref<8x256xf32, #tpu.memory_space<vmem>>, %arg2: memref<8x1xf32, #tpu.memory_space<vmem>>) attributes {dimension_semantics = [#tpu.dimension_semantics<parallel>], iteration_bounds = array<i64: 1>, scalar_prefetch = 0 : i64, scratch_operands = 0 : i64, tpu.core_type = #tpu.core_type<tc>, window_params = [{transform_indices = @transform_0, window_bounds = array<i64: 8, 256>}, {transform_indices = @transform_1, window_bounds = array<i64: 8, 1>}]} {
    %c0 = arith.constant 0 : index
    %c0_0 = arith.constant 0 : index
    %0 = vector.load %arg1[%c0, %c0_0] : memref<8x256xf32, #tpu.memory_space<vmem>>, vector<8x256xf32>
    %1 = arith.mulf %0, %0 : vector<8x256xf32>
    %2 = arith.mulf %1, %0 : vector<8x256xf32>
    %cst = arith.constant dense<0.000000e+00> : vector<8xf32>
    %3 = vector.multi_reduction <add>, %2, %cst [1] : vector<8x256xf32> to vector<8xf32>
    %4 = vector.shape_cast %3 : vector<8xf32> to vector<8x1xf32>
    %cst_1 = arith.constant 3.906250e-03 : f32
    %5 = vector.broadcast %cst_1 : f32 to vector<8x1xf32>
    %6 = arith.mulf %4, %5 : vector<8x1xf32>
    %cst_2 = arith.constant 9.99999996E-13 : f32
    %7 = vector.broadcast %cst_2 : f32 to vector<8x1xf32>
    %8 = arith.addf %6, %7 : vector<8x1xf32>
    %cst_3 = arith.constant 0.333333343 : f32
    %9 = vector.broadcast %cst_3 : f32 to vector<8x1xf32>
    %10 = math.powf %8, %9 : vector<8x1xf32>
    %c0_4 = arith.constant 0 : index
    %c0_5 = arith.constant 0 : index
    %11 = vector.load %arg2[%c0_4, %c0_5] : memref<8x1xf32, #tpu.memory_space<vmem>>, vector<8x1xf32>
    tpu.vector_store %arg2[%c0_4, %c0_5], %10 {strides = array<i32>} : memref<8x1xf32, #tpu.memory_space<vmem>>, vector<8x1xf32>,
    return
  }
  func.func @transform_0(%arg0: i32) -> (i32, i32) {
    %c0_i32 = arith.constant 0 : i32
    %c0_i32_0 = arith.constant 0 : i32
    return %arg0, %c0_i32 : i32, i32
  }
  func.func @transform_1(%arg0: i32) -> (i32, i32) {
    %c0_i32 = arith.constant 0 : i32
    %c0_i32_0 = arith.constant 0 : i32
    return %arg0, %c0_i32 : i32, i32
  }
}

</mosaic_0001>

<bundles_post_ra>
// kernel: tpu_custom_call.1
= control target key start
LH: loop header
LB: loop body
LE: loop exit
PB: predicated region body
PF: predicated region fallthrough
CT: control target
= control target key end

     0   :  { %6 = vsyncpa [#allocation3], 0  ;;  %s86_s6 = smov [#allocation2]   ;;  %s112_s0 = inlined_call_operand.hbm [shape: f32[8,256], index: 0, kind: input, shape index: {}]   ;;  %s113_s1 = inlined_call_operand.vmem [shape: f32[8,1], index: 1, kind: output, shape index: {}]  }
   0x1   :  { %s13_s7 = sshll.u32 %s86_s6, 4  ;;  %s62_s10 = scalar_lea.hbm %s112_s0, 256  ;;  %s14_s7 = int_to_ptr.vmem [resolvable:$true] %s13_s7 }
   0x2   :  { %p63_p0 = scmp.ne.s32.totalorder %s112_s0, %s62_s10  ;;  %p66_p1 = scmp.lt.u32.totalorder %s62_s10, %s112_s0 }
   0x4   :  { %p68_p2 = pnand %p66_p1, %p63_p0 }
   0x6   :  { %71 = shalt.err (!%p68_p2)
}
   0x7   :  { %s72_s15 = scalar_lea.vmem %s14_s7, 256  ;;  %p77_p4 = scmp.lt.s32.totalorder %s14_s7, %s14_s7 }
   0x8   :  { %p73_p3 = scmp.ne.s32.totalorder %s14_s7, %s72_s15  ;;  %p78_p5 = scmp.lt.s32.totalorder %s72_s15, %s72_s15 }
   0xa   :  { %p79_p6 = por %p78_p5, %p77_p4 }
   0xc   :  { %p80_p7 = pnand %p79_p6, %p73_p3 }
   0xe   :  { %83 = shalt.err (!%p80_p7)
}
   0xf   :  { %16 = dma.hbm_to_vmem [thread:$0]  %s112_s0, 256, %s14_s7, [#allocation3]  }
  0x10   :  { %84 = dma.done.wait [#allocation3], 256  }
  0x11   :  { %85 = vsyncadd [#allocation3], 4294967040  ;;  %v20_v0 = vld [vmem:[#allocation2] sm:$0xff]  ;;  %v21_v1 = vld [vmem:[#allocation2 + $0x8] sm:$0xff]  ;;  %vm32_vm4 = vcmask 7168  }
  0x12   :  { %v22_v2 = vmul.f32 %v20_v0, %v20_v0  ;;  %v23_v3 = vmul.f32 %v21_v1, %v21_v1 }
  0x14   :  { %v24_v4 = vmul.f32 %v22_v2, %v20_v0  ;;  %v25_v5 = vmul.f32 %v23_v3, %v21_v1 }
  0x16   :  { %v26_v6 = vadd.f32 %v25_v5, %v24_v4 }
  0x18   :  { %27 = vadd.xlane.f32.xlu0 %v26_v6 }
  0xa5   :  { %v28_v7 = vpop.xlane.xlu0 %27 }
  0xa6   :  { %v29_v8 = vmul.f32 0.00390625, %v28_v7 }
  0xa8   :  { %v30_v9 = vadd.f32 1e-12, %v29_v8 }
  0xaa   :  { %v41_v10 = vand.u32 2147483647, %v30_v9  ;;  %v45_v13 = vand.u32 2147483648, %v30_v9  ;;  %vm40_vm2 = vcmp.lt.f32.partialorder %v30_v9, 0.0  ;;  %vm39_vm3 = vcmp.eq.f32.partialorder %v30_v9, 0.0 }
  0xac   :  { %58 = vlog2.f32 %v41_v10  ;;  %vm49_vm0 = vweird.f32 %v41_v10  ;;  %vm51_vm1 = vcmp.eq.f32.partialorder %v41_v10, 0.0  ;;  %vm42_vm5 = vcmp.eq.f32.partialorder %v41_v10, inf }
  0xb6   :  { %v59_v11 = vpop.eup %58 }
  0xb7   :  { %v46_v12 = vmul.f32 0.33333334, %v59_v11 }
  0xb9   :  { %60 = vpow2.f32 %v46_v12 }
  0xc3   :  { %v61_v14 = vpop.eup %60 }
  0xc4   :  { %v48_v15 = vor.u32 %v61_v14, %v45_v13 }
  0xc6   :  { %v50_v16 = vsel %vm49_vm0, %v30_v9, %v48_v15 }
  0xc7   :  { %v53_v17 = vsel %vm51_vm1, %v45_v13, %v50_v16 }
  0xc8   :  { %v54_v18 = vsel %vm40_vm2, nan, %v53_v17 }
  0xc9   :  { %v55_v19 = vsel %vm39_vm3, 0.0, %v54_v18 }
  0xca   :  { %v56_v20 = vsel %vm42_vm5, inf, %v55_v19 }
  0xcb   :  { %33 = vst.msk [vmem:[%s113_s1] sm:$0xff] %vm32_vm4, %v56_v20 }
  0xcc   :  { %38 = vsyncpa [#allocation3], 1 }

</bundles_post_ra>
